<compile_context>
chip_gen: v7x
topology: tpu7x:2x2x1
jax: 0.10.0
libtpu: 0.0.40
codegen_flags: <defaults>
</compile_context>

<pallas_src>
import functools

import jax
import jax.numpy as jnp
from jax.experimental import pallas as pl
from jax.experimental.pallas import tpu as pltpu


def _round_up(x, m):
    return (x + m - 1) // m * m


def _cdiv(a, b):
    return (a + b - 1) // b


def _same_pad(size, k, s):
    """Replicates Unit3D.compute_pad (TF-style 'same'), split front/back."""
    if size % s == 0:
        pad = max(k - s, 0)
    else:
        pad = max(k - size % s, 0)
    return pad // 2, pad - pad // 2


def _fold_bn(conv_b, bn_gamma, bn_beta, bn_mean, bn_var, cout,
             use_batch_norm, use_bias, eps):
    """Fold eval-mode BN (+ optional conv bias) into per-channel scale/shift."""
    if use_batch_norm:
        scale = (bn_gamma * jax.lax.rsqrt(bn_var + eps)).astype(jnp.float32)
        shift = (bn_beta - bn_mean * scale).astype(jnp.float32)
    else:
        scale = jnp.ones((cout,), jnp.float32)
        shift = jnp.zeros((cout,), jnp.float32)
    if use_bias:
        shift = shift + conv_b.astype(jnp.float32) * scale
    return scale, shift


# ---------------------------------------------------------------------------
# Path A: 1x1x1 kernel (Unit3D default).  Direct NCDHW layout, no transpose,
# no im2col, no accumulator.  out[b, :, s] = relu(scale * (W @ x[b, :, s]) + shift)
# ---------------------------------------------------------------------------
def _pointwise_kernel(x_ref, w_ref, ss_ref, o_ref, *, apply_relu):
    # x_ref : (1, Cin, TS) f32   w_ref: (Cout, Cin) f32
    # ss_ref: (2, Cout, 1) f32 (row 0 = scale, row 1 = shift)
    # o_ref : (1, Cout, TS)
    x = x_ref[0].astype(jnp.bfloat16)            # cast per-tile for the MXU
    w = w_ref[...].astype(jnp.bfloat16)
    y = jnp.dot(w, x, preferred_element_type=jnp.float32)   # (Cout, TS)
    y = y * ss_ref[0] + ss_ref[1]
    if apply_relu:
        y = jnp.maximum(y, 0.0)
    o_ref[0] = y.astype(o_ref.dtype)


def _pointwise_path(x, conv_w, scale, shift, stride, apply_relu):
    cout = conv_w.shape[0]
    st, sh, sw = stride
    if (st, sh, sw) != (1, 1, 1):
        # 1x1x1 "same" padding is always zero; striding is just subsampling.
        x = x[:, :, ::st, ::sh, ::sw]
    b, cin, to, ho, wo = x.shape
    s = to * ho * wo
    xr = x.reshape(b, cin, s)                    # free: contiguous collapse

    # Lane-dense tiling of the fused spatial axis.
    if s < 128:
        sp, tile_s = s, s
    else:
        sp = _round_up(s, 128)
        budget = 24 * 1024 * 1024
        tile_s = 128
        for cand in (2048, 1024, 512, 256, 128):
            if sp % cand == 0 and (cin + cout) * cand * 4 * 2 <= budget:
                tile_s = cand
                break
        # Guarantee >= 2 parallel grid tiles so v7x megacore has work.
        while b * (sp // tile_s) < 2 and tile_s >= 256:
            tile_s //= 2
    if sp != s:
        xr = jnp.pad(xr, ((0, 0), (0, 0), (0, sp - s)))

    w2 = conv_w.reshape(cout, cin)
    ss = jnp.stack([scale, shift], axis=0).reshape(2, cout, 1)

    grid = (b, sp // tile_s)
    flops = 2 * b * sp * cin * cout
    bytes_accessed = xr.size * 4 + w2.size * 4 + ss.size * 4 + b * cout * sp * 4

    out = pl.pallas_call(
        functools.partial(_pointwise_kernel, apply_relu=apply_relu),
        out_shape=jax.ShapeDtypeStruct((b, cout, sp), x.dtype),
        grid_spec=pltpu.PrefetchScalarGridSpec(
            num_scalar_prefetch=0,
            grid=grid,
            in_specs=[
                pl.BlockSpec((1, cin, tile_s), lambda i, j: (i, 0, j)),   # x
                pl.BlockSpec((cout, cin), lambda i, j: (0, 0)),           # W
                pl.BlockSpec((2, cout, 1), lambda i, j: (0, 0, 0)),       # ss
            ],
            out_specs=pl.BlockSpec((1, cout, tile_s), lambda i, j: (i, 0, j)),
        ),
        compiler_params=pltpu.CompilerParams(
            dimension_semantics=("parallel", "parallel"),
            vmem_limit_bytes=48 * 1024 * 1024),
        cost_estimate=pl.CostEstimate(flops=flops, transcendentals=0,
                                      bytes_accessed=bytes_accessed),
    )(xr, w2, ss)

    if sp != s:
        out = out[:, :, :s]
    return out.reshape(b, cout, to, ho, wo)      # already NCDHW


# ---------------------------------------------------------------------------
# Path B: general kernel_shape.  bf16 im2col GEMM with folded BN/ReLU epilogue.
# ---------------------------------------------------------------------------
def _gemm_single_kernel(x_ref, w_ref, ss_ref, o_ref, *, apply_relu):
    # Whole reduction in one step: no VMEM accumulator round-trip.
    y = jnp.dot(x_ref[...], w_ref[...], preferred_element_type=jnp.float32)
    y = y * ss_ref[0:1, :] + ss_ref[1:2, :]
    if apply_relu:
        y = jnp.maximum(y, 0.0)
    o_ref[...] = y.astype(o_ref.dtype)


def _gemm_multi_kernel(x_ref, w_ref, ss_ref, o_ref, acc_ref, *, apply_relu):
    k = pl.program_id(2)
    p = jnp.dot(x_ref[...], w_ref[...], preferred_element_type=jnp.float32)

    @pl.when(k == 0)
    def _():
        acc_ref[...] = p             # first step writes (no zero-init + RMW)

    @pl.when(k > 0)
    def _():
        acc_ref[...] += p

    @pl.when(k == pl.num_programs(2) - 1)
    def _():
        y = acc_ref[...] * ss_ref[0:1, :] + ss_ref[1:2, :]
        if apply_relu:
            y = jnp.maximum(y, 0.0)
        o_ref[...] = y.astype(o_ref.dtype)


def _conv_gemm_path(x, conv_w, scale, shift, stride, apply_relu):
    b, cin, t, h, w = x.shape
    cout, _, kt, kh, kw = conv_w.shape
    st, sh, sw = stride

    pt_f, pt_b = _same_pad(t, kt, st)
    ph_f, ph_b = _same_pad(h, kh, sh)
    pw_f, pw_b = _same_pad(w, kw, sw)
    tp, hp, wp = t + pt_f + pt_b, h + ph_f + ph_b, w + pw_f + pw_b
    to = (tp - kt) // st + 1
    ho = (hp - kh) // sh + 1
    wo = (wp - kw) // sw + 1

    # One x-sized pass: pad + channels-last + bf16 cast (fused by XLA).
    xp = jnp.pad(x, ((0, 0), (0, 0), (pt_f, pt_b), (ph_f, ph_b), (pw_f, pw_b)))
    xp = xp.transpose(0, 2, 3, 4, 1).astype(jnp.bfloat16)   # (B,Tp,Hp,Wp,Cin)

    # im2col directly in (B,To,Ho,Wo,tap,Cin) order, in bf16, no post-transpose.
    taps = []
    for dt in range(kt):
        for dh in range(kh):
            for dw in range(kw):
                taps.append(xp[:, dt:dt + st * to:st,
                               dh:dh + sh * ho:sh,
                               dw:dw + sw * wo:sw, :])
    patches = jnp.stack(taps, axis=4)            # (B,To,Ho,Wo,K,Cin) bf16
    m = b * to * ho * wo
    kred = kt * kh * kw * cin
    x2d = patches.reshape(m, kred)               # free: contiguous collapse

    # weights -> (Kred, Cout), matching (tap, Cin) reduction order; bf16.
    w2d = conv_w.transpose(2, 3, 4, 1, 0).reshape(kred, cout).astype(jnp.bfloat16)

    # --- tile selection -----------------------------------------------------
    np_ = _round_up(cout, 128)                   # lane-dense output channels
    tile_n = np_ if np_ <= 1024 else next(c for c in (1024, 512, 256, 128)
                                          if np_ % c == 0)
    if kred > 1024:                              # stream the reduction axis
        tile_k = 512
    else:
        tile_k = _round_up(kred, 128)            # lane-dense K, single step
    kp = _round_up(kred, tile_k)

    n_m = _cdiv(m, 512)
    tile_m = _round_up(_cdiv(m, n_m), 16)
    # Guarantee >= 2 parallel grid tiles so v7x megacore has work.
    if n_m * (np_ // tile_n) < 2 and m > 16:
        n_m = 2
        tile_m = _round_up(_cdiv(m, n_m), 16)
    mp = n_m * tile_m

    if (mp, kp) != (m, kred):
        x2d = jnp.pad(x2d, ((0, mp - m), (0, kp - kred)))     # bf16 pad pass
    if (kp, np_) != (kred, cout):
        w2d = jnp.pad(w2d, ((0, kp - kred), (0, np_ - cout)))
    ss = jnp.stack([jnp.pad(scale, (0, np_ - cout)),
                    jnp.pad(shift, (0, np_ - cout))], axis=0)  # (2, Np) f32

    multi_k = (kp // tile_k) > 1
    flops = 2 * mp * kp * np_
    bytes_accessed = x2d.size * 2 + w2d.size * 2 + ss.size * 4 + mp * np_ * 4

    if multi_k:
        kernel = functools.partial(_gemm_multi_kernel, apply_relu=apply_relu)
        grid = (mp // tile_m, np_ // tile_n, kp // tile_k)
        in_specs = [
            pl.BlockSpec((tile_m, tile_k), lambda i, j, k: (i, k)),   # x
            pl.BlockSpec((tile_k, tile_n), lambda i, j, k: (k, j)),   # W
            pl.BlockSpec((2, tile_n), lambda i, j, k: (0, j)),        # scale/shift
        ]
        out_spec = pl.BlockSpec((tile_m, tile_n), lambda i, j, k: (i, j))
        scratch = [pltpu.VMEM((tile_m, tile_n), jnp.float32)]
        semantics = ("parallel", "parallel", "arbitrary")
    else:
        kernel = functools.partial(_gemm_single_kernel, apply_relu=apply_relu)
        grid = (mp // tile_m, np_ // tile_n)
        in_specs = [
            pl.BlockSpec((tile_m, tile_k), lambda i, j: (i, 0)),
            pl.BlockSpec((tile_k, tile_n), lambda i, j: (0, j)),
            pl.BlockSpec((2, tile_n), lambda i, j: (0, j)),
        ]
        out_spec = pl.BlockSpec((tile_m, tile_n), lambda i, j: (i, j))
        scratch = []
        semantics = ("parallel", "parallel")

    out = pl.pallas_call(
        kernel,
        out_shape=jax.ShapeDtypeStruct((mp, np_), x.dtype),
        grid_spec=pltpu.PrefetchScalarGridSpec(
            num_scalar_prefetch=0,
            grid=grid,
            in_specs=in_specs,
            out_specs=out_spec,
            scratch_shapes=scratch),
        compiler_params=pltpu.CompilerParams(
            dimension_semantics=semantics,
            vmem_limit_bytes=48 * 1024 * 1024),
        cost_estimate=pl.CostEstimate(flops=flops, transcendentals=0,
                                      bytes_accessed=bytes_accessed),
    )(x2d, w2d, ss)

    y = out[:m, :cout].reshape(b, to, ho, wo, cout)
    return y.transpose(0, 4, 1, 2, 3)            # (B, Cout, To, Ho, Wo)


# ---------------------------------------------------------------------------
# Public entry point + plain-JAX reference
# ---------------------------------------------------------------------------
def unit3d_forward(x, conv_w, conv_b=None, bn_gamma=None, bn_beta=None,
                   bn_mean=None, bn_var=None, *, stride=(1, 1, 1),
                   use_batch_norm=True, use_bias=False, eps=1e-3,
                   apply_relu=True):
    """Unit3D forward (inference).

    x:      (B, Cin, T, H, W) float32
    conv_w: (Cout, Cin, kt, kh, kw)  (PyTorch Conv3d layout)
    """
    _, cin, _, _, _ = x.shape
    cout, cin_w, kt, kh, kw = conv_w.shape
    assert cin_w == cin
    scale, shift = _fold_bn(conv_b, bn_gamma, bn_beta, bn_mean, bn_var, cout,
                            use_batch_norm, use_bias, eps)
    if kt == kh == kw == 1:
        return _pointwise_path(x, conv_w, scale, shift, stride, apply_relu)
    return _conv_gemm_path(x, conv_w, scale, shift, stride, apply_relu)


def unit3d_reference(x, conv_w, conv_b, bn_gamma, bn_beta, bn_mean, bn_var, *,
                     stride, use_batch_norm, use_bias, eps=1e-3,
                     apply_relu=True):
    """Plain-JAX reference (same padding rule, XLA conv, eval-mode BN)."""
    _, _, t, h, w = x.shape
    _, _, kt, kh, kw = conv_w.shape
    st, sh, sw = stride
    pt_f, pt_b = _same_pad(t, kt, st)
    ph_f, ph_b = _same_pad(h, kh, sh)
    pw_f, pw_b = _same_pad(w, kw, sw)
    xp = jnp.pad(x, ((0, 0), (0, 0), (pt_f, pt_b), (ph_f, ph_b), (pw_f, pw_b)))
    y = jax.lax.conv_general_dilated(
        xp, conv_w, window_strides=(st, sh, sw), padding='VALID',
        dimension_numbers=('NCDHW', 'OIDHW', 'NCDHW'))
    if use_bias:
        y = y + conv_b.reshape(1, -1, 1, 1, 1)
    if use_batch_norm:
        scale = bn_gamma * jax.lax.rsqrt(bn_var + eps)
        shift = bn_beta - bn_mean * scale
        y = y * scale.reshape(1, -1, 1, 1, 1) + shift.reshape(1, -1, 1, 1, 1)
    if apply_relu:
        y = jnp.maximum(y, 0.0)
    return y


if __name__ == "__main__":
    key = jax.random.PRNGKey(0)
    k = jax.random.split(key, 20)

    # ---- Case 1: Unit3D defaults: 1x1x1 conv, stride 1, BN, ReLU, no bias --
    B, Cin, T, H, W = 2, 4, 8, 16, 16
    Cout = 4
    x = jax.random.normal(k[0], (B, Cin, T, H, W), jnp.float32)
    bound = 1.0 / (Cin ** 0.5)
    w1 = jax.random.uniform(k[1], (Cout, Cin, 1, 1, 1), jnp.float32, -bound, bound)
    gamma = jax.random.uniform(k[2], (Cout,), jnp.float32, 0.5, 1.5)
    beta = 0.1 * jax.random.normal(k[3], (Cout,), jnp.float32)
    mean = 0.1 * jax.random.normal(k[4], (Cout,), jnp.float32)
    var = jax.random.uniform(k[5], (Cout,), jnp.float32, 0.5, 1.5)

    y1 = unit3d_forward(x, w1, None, gamma, beta, mean, var,
                        stride=(1, 1, 1), use_batch_norm=True, use_bias=False)
    y1 = jax.block_until_ready(y1)
    y1_ref = unit3d_reference(x, w1, None, gamma, beta, mean, var,
                              stride=(1, 1, 1), use_batch_norm=True,
                              use_bias=False)
    assert y1.shape == (B, Cout, T, H, W)
    assert jnp.allclose(y1, y1_ref, atol=5e-2, rtol=5e-2), \
        float(jnp.max(jnp.abs(y1 - y1_ref)))

    # ---- Case 2: 3x3x3 conv, stride (1,2,2), conv bias + BN + ReLU ---------
    Cout2 = 8
    bound2 = 1.0 / ((Cin * 27) ** 0.5)
    w2 = jax.random.uniform(k[6], (Cout2, Cin, 3, 3, 3), jnp.float32,
                            -bound2, bound2)
    b2 = 0.1 * jax.random.normal(k[7], (Cout2,), jnp.float32)
    gamma2 = jax.random.uniform(k[8], (Cout2,), jnp.float32, 0.5, 1.5)
    beta2 = 0.1 * jax.random.normal(k[9], (Cout2,), jnp.float32)
    mean2 = 0.1 * jax.random.normal(k[10], (Cout2,), jnp.float32)
    var2 = jax.random.uniform(k[11], (Cout2,), jnp.float32, 0.5, 1.5)

    y2 = unit3d_forward(x, w2, b2, gamma2, beta2, mean2, var2,
                        stride=(1, 2, 2), use_batch_norm=True, use_bias=True)
    y2 = jax.block_until_ready(y2)
    y2_ref = unit3d_reference(x, w2, b2, gamma2, beta2, mean2, var2,
                              stride=(1, 2, 2), use_batch_norm=True,
                              use_bias=True)
    assert y2.shape == y2_ref.shape == (B, Cout2, 8, 8, 8)
    assert jnp.allclose(y2, y2_ref, atol=5e-2, rtol=5e-2), \
        float(jnp.max(jnp.abs(y2 - y2_ref)))

    # ---- Case 3: larger Cin so the K axis is streamed (multi-step reduce) --
    B3, Cin3, T3, H3, W3, Cout3 = 1, 48, 4, 8, 8, 16
    x3 = jax.random.normal(k[12], (B3, Cin3, T3, H3, W3), jnp.float32)
    bound3 = 1.0 / ((Cin3 * 27) ** 0.5)
    w3 = jax.random.uniform(k[13], (Cout3, Cin3, 3, 3, 3), jnp.float32,
                            -bound3, bound3)
    gamma3 = jax.random.uniform(k[14], (Cout3,), jnp.float32, 0.5, 1.5)
    beta3 = 0.1 * jax.random.normal(k[15], (Cout3,), jnp.float32)
    mean3 = 0.1 * jax.random.normal(k[16], (Cout3,), jnp.float32)
    var3 = jax.random.uniform(k[17], (Cout3,), jnp.float32, 0.5, 1.5)

    y3 = unit3d_forward(x3, w3, None, gamma3, beta3, mean3, var3,
                        stride=(1, 1, 1), use_batch_norm=True, use_bias=False)
    y3 = jax.block_until_ready(y3)
    y3_ref = unit3d_reference(x3, w3, None, gamma3, beta3, mean3, var3,
                              stride=(1, 1, 1), use_batch_norm=True,
                              use_bias=False)
    assert y3.shape == y3_ref.shape == (B3, Cout3, T3, H3, W3)
    assert jnp.allclose(y3, y3_ref, atol=5e-2, rtol=5e-2), \
        float(jnp.max(jnp.abs(y3 - y3_ref)))

    print("KERNEL_OK")
</pallas_src>

<mosaic_0001>
module attributes {stable_mosaic.version = 11 : i64} {
  func.func @_pointwise_kernel(%arg0: i32, %arg1: i32, %arg2: memref<1x4x2048xf32, #tpu.memory_space<vmem>>, %arg3: memref<4x4xf32, #tpu.memory_space<vmem>>, %arg4: memref<2x4x1xf32, #tpu.memory_space<vmem>>, %arg5: memref<1x4x2048xf32, #tpu.memory_space<vmem>>) attributes {dimension_semantics = [#tpu.dimension_semantics<parallel>, #tpu.dimension_semantics<parallel>], iteration_bounds = array<i64: 2, 1>, scalar_prefetch = 0 : i64, scratch_operands = 0 : i64, tpu.core_type = #tpu.core_type<tc>, window_params = [{transform_indices = @transform_0, window_bounds = array<i64: 1, 4, 2048>}, {pipeline_mode = #tpu.pipeline_mode<synchronous>, transform_indices = @transform_1, window_bounds = array<i64: 4, 4>}, {pipeline_mode = #tpu.pipeline_mode<synchronous>, transform_indices = @transform_2, window_bounds = array<i64: 2, 4, 1>}, {transform_indices = @transform_3, window_bounds = array<i64: 1, 4, 2048>}]} {
    %c0 = arith.constant 0 : index
    %c0_0 = arith.constant 0 : index
    %c0_1 = arith.constant 0 : index
    %0 = vector.load %arg2[%c0, %c0_0, %c0_1] : memref<1x4x2048xf32, #tpu.memory_space<vmem>>, vector<1x4x2048xf32>
    %1 = vector.shape_cast %0 : vector<1x4x2048xf32> to vector<4x2048xf32>
    %2 = arith.truncf %1 : vector<4x2048xf32> to vector<4x2048xbf16>
    %c0_2 = arith.constant 0 : index
    %c0_3 = arith.constant 0 : index
    %3 = vector.load %arg3[%c0_2, %c0_3] : memref<4x4xf32, #tpu.memory_space<vmem>>, vector<4x4xf32>
    %4 = arith.truncf %3 : vector<4x4xf32> to vector<4x4xbf16>
    %cst = arith.constant dense<0.000000e+00> : vector<4x2048xf32>
    %5 = tpu.matmul %4, %2, %cst {dimension_numbers = #tpu.dot_dimension_numbers<[1], [0], [0], [1], [0, 0, 1, 1], [], []>} : vector<4x4xbf16>, vector<4x2048xbf16>, vector<4x2048xf32> -> vector<4x2048xf32>
    %c0_4 = arith.constant 0 : index
    %c0_5 = arith.constant 0 : index
    %c0_6 = arith.constant 0 : index
    %6 = vector.load %arg4[%c0_4, %c0_5, %c0_6] : memref<2x4x1xf32, #tpu.memory_space<vmem>>, vector<1x4x1xf32>
    %7 = vector.shape_cast %6 : vector<1x4x1xf32> to vector<4x1xf32>
    %8 = vector.broadcast %7 : vector<4x1xf32> to vector<4x2048xf32>
    %9 = arith.mulf %5, %8 : vector<4x2048xf32>
    %c1 = arith.constant 1 : index
    %c0_7 = arith.constant 0 : index
    %c0_8 = arith.constant 0 : index
    %10 = vector.load %arg4[%c1, %c0_7, %c0_8] : memref<2x4x1xf32, #tpu.memory_space<vmem>>, vector<1x4x1xf32>
    %11 = vector.shape_cast %10 : vector<1x4x1xf32> to vector<4x1xf32>
    %12 = vector.broadcast %11 : vector<4x1xf32> to vector<4x2048xf32>
    %13 = arith.addf %9, %12 : vector<4x2048xf32>
    %cst_9 = arith.constant 0.000000e+00 : f32
    %14 = vector.broadcast %cst_9 : f32 to vector<4x2048xf32>
    %15 = arith.maximumf %13, %14 : vector<4x2048xf32>
    %c0_10 = arith.constant 0 : index
    %c0_11 = arith.constant 0 : index
    %c0_12 = arith.constant 0 : index
    %16 = vector.load %arg5[%c0_10, %c0_11, %c0_12] : memref<1x4x2048xf32, #tpu.memory_space<vmem>>, vector<1x4x2048xf32>
    %17 = vector.shape_cast %16 : vector<1x4x2048xf32> to vector<4x2048xf32>
    %18 = vector.shape_cast %15 : vector<4x2048xf32> to vector<1x4x2048xf32>
    tpu.vector_store %arg5[%c0_10, %c0_11, %c0_12], %18 {strides = array<i32>} : memref<1x4x2048xf32, #tpu.memory_space<vmem>>, vector<1x4x2048xf32>,
    return
  }
  func.func @transform_0(%arg0: i32, %arg1: i32) -> (i32, i32, i32) {
    %c0_i32 = arith.constant 0 : i32
    %c0_i32_0 = arith.constant 0 : i32
    return %arg0, %c0_i32, %arg1 : i32, i32, i32
  }
  func.func @transform_1(%arg0: i32, %arg1: i32) -> (i32, i32) {
    %c0_i32 = arith.constant 0 : i32
    %c0_i32_0 = arith.constant 0 : i32
    %c0_i32_1 = arith.constant 0 : i32
    return %c0_i32, %c0_i32_0 : i32, i32
  }
  func.func @transform_2(%arg0: i32, %arg1: i32) -> (i32, i32, i32) {
    %c0_i32 = arith.constant 0 : i32
    %c0_i32_0 = arith.constant 0 : i32
    %c0_i32_1 = arith.constant 0 : i32
    %c0_i32_2 = arith.constant 0 : i32
    return %c0_i32, %c0_i32_0, %c0_i32_1 : i32, i32, i32
  }
  func.func @transform_3(%arg0: i32, %arg1: i32) -> (i32, i32, i32) {
    %c0_i32 = arith.constant 0 : i32
    %c0_i32_0 = arith.constant 0 : i32
    return %arg0, %c0_i32, %arg1 : i32, i32, i32
  }
}

</mosaic_0001>

<bundles_post_ra>
// kernel: tpu_custom_call.1
= control target key start
LH: loop header
LB: loop body
LE: loop exit
PB: predicated region body
PF: predicated region fallthrough
CT: control target
= control target key end

     0   :  { %8 = vsyncpa [#allocation3], 0  ;;  %s1359_s0 = inlined_call_operand.hbm [shape: f32[2,4,2048], index: 0, kind: input, shape index: {}]   ;;  %s1360_s1 = inlined_call_operand.vmem [shape: f32[4,4], index: 1, kind: input, shape index: {}]   ;;  %s1361_s2 = inlined_call_operand.vmem [shape: f32[2,4,1], index: 2, kind: input, shape index: {}]   ;;  %s1362_s3 = inlined_call_operand.hbm [shape: f32[2,4,2048], index: 3, kind: output, shape index: {}]  }
   0x1   :  { %10 = vsyncpa [#allocation3 + $0x1], 0 }
   0x2   :  { %11 = vsyncpa [#allocation4], 0 }
   0x3   :  { %13 = vsyncpa [#allocation4 + $0x1], 0  ;;  %s1084_s12 = smov 0   ;;  %s1086_s13 = smov 0  }
   0x4   :  { %s1088_s14 = smov 0   ;;  %s1090_s15 = smov 0  }
   0x5   :  { %s1092_s16 = smov 0   ;;  %s1094_s17 = smov 0  }
   0x6 LB: > { %s841_s18 = sadd.s32 4294967295, %s1059_s17   ;;  %s842_s19 = sadd.s32 4294967294, %s1059_s17   ;;  %s1059_s17 = sphi %s1094_s17, %s19_s17   ;;  %s1055_s16 = sphi %s1092_s16, %s1378_s16   ;;  %s1051_s15 = sphi %s1090_s15, %s1377_s15   ;;  %s1047_s14 = sphi %s1088_s14, %s1376_s14   ;;  %s1043_s13 = sphi %s1086_s13, %s1375_s13   ;;  %s1039_s12 = sphi %s1084_s12, %s1374_s12  }
   0x7   : > { %s31_s20 = sadd.s32 1, %s1055_s16  ;;  %s40_s21 = sadd.s32 1, %s1047_s14 }
   0x8   : > { %p33_p0 = scmp.ge.s32.totalorder %s31_s20, 2  ;;  %p47_p1 = scmp.ne.s32.totalorder %s1047_s14, %s1043_s13 }
   0x9   : > { %p48_p2 = scmp.eq.s32.totalorder %s1059_s17, 0  ;;  %p53_p3 = scmp.ne.s32.totalorder %s1043_s13, %s1039_s12 }
   0xa   : > { %s1380_s20 = smov (%p33_p0, %s31_s20), 0  ;;  %p54_p5 = scmp.eq.s32.totalorder %s841_s18, 0 }
   0xb   : > { %p1125_p4 = por %p48_p2, %p47_p1  ;;  %s35_s23 = ssub.s32 %s1055_s16, %s1380_s20 }
   0xc   : > { %p121_p6 = scmp.eq.s32.totalorder %s841_s18, 1  ;;  %p38_p7 = scmp.eq.s32.totalorder %s35_s23, 0 }
   0xd   : > { %p1131_p8 = por %p54_p5, %p53_p3  ;;  %p127_p10 = scmp.eq.s32.totalorder %s842_s19, 1 }
   0xe   : > { %p1135_p9 = por %p121_p6, %p47_p1  ;;  %p887_p13 = scmp.lt.s32.totalorder %s1059_s17, 2 }
   0xf   : > { %s1140_s26 = scalar_select %p38_p7, %s1047_s14, %s40_s21  }
  0x10   : > { %s1366_s25 = scalar_select %p1135_p9, 1, 0 }
  0x11   : > { %p1142_p11 = por %p127_p10, %p53_p3  ;;  %s153_s28 = sand.u32 1, %s1047_s14  }
  0x12   : > { %s845_s29 = sshll.u32 %s153_s28, 6  ;;  %s873_s30 = sshll.u32 %s1055_s16, 10 }
  0x13   : > { %s1367_s27 = scalar_select %p1142_p11, 1, 0 }
  0x14   : > { %s1153_s6 = scalar_lea.hbm %s1359_s0, %s873_s30  ;;  %s157_s7 = scalar_lea.vmem [#allocation2], %s845_s29 }
  0x15   : > { %s167_s8 = sshll.u32 %s157_s7, 4  ;;  %p1159_p0 = pnand %p887_p13, %p1125_p4  ;;  %s1155_s8 = int_to_ptr.vmem [resolvable:$true] %s167_s8 }
  0x16   : > { %s154_s10 = scalar_lea.sflag [#allocation3], %s153_s28  ;;  %s947_s11 = scalar_lea.hbm %s1153_s6, 1024 }
  0x17   : > { %p948_p3 = scmp.ne.s32.totalorder %s1153_s6, %s947_s11  ;;  %p949_p5 = pneg %p1159_p0 }
  0x18   : > { %s952_s21 = scalar_lea.hbm %s1359_s0, 2048  ;;  %p953_p4 = scmp.lt.u32.totalorder %s1153_s6, %s1359_s0 }
  0x19   : > { %p950_p6 = pnand %p949_p5, %p948_p3  ;;  %p954_p10 = scmp.lt.u32.totalorder %s952_s21, %s947_s11 }
  0x1a   : > { %p956_p12 = scmp.lt.u32.totalorder %s947_s11, %s1153_s6 }
  0x1b   : > { %p951_p7 = pneg %p950_p6  ;;  %p955_p13 = por %p954_p10, %p953_p4 }
  0x1d   : > { %p957_p1 = por %p956_p12, %p955_p13 }
  0x1f   : > { %p958_p2 = pnand %p957_p1, %p951_p7 }
  0x21   : > { %961 = shalt.err (!%p958_p2)
}
  0x22   : > { %s962_s28 = scalar_lea.vmem %s1155_s8, 1024  ;;  %s1061_s29 = smov [#allocation2]  }
  0x23   : > { %p963_p3 = scmp.ne.s32.totalorder %s1155_s8, %s962_s28  ;;  %s967_s30 = sshll.u32 %s1061_s29, 4  ;;  %s968_s30 = int_to_ptr.vmem [resolvable:$false] %s967_s30 }
  0x24   : > { %s969_s4 = scalar_lea.vmem %s968_s30, 2048  ;;  %p970_p9 = scmp.lt.s32.totalorder %s1155_s8, %s968_s30 }
  0x25   : > { %p965_p6 = pnand %p963_p3, %p949_p5  ;;  %p971_p4 = scmp.lt.s32.totalorder %s969_s4, %s962_s28 }
  0x27   : > { %p966_p11 = pneg %p965_p6  ;;  %p972_p10 = por %p971_p4, %p970_p9 }
  0x29   : > { %p973_p12 = pnand %p972_p10, %p966_p11 }
  0x2b   : > { %976 = shalt.err (!%p973_p12)
}
  0x2c   : > { %882 = dma.hbm_to_vmem [thread:$0]  (!%p1159_p0), %s1153_s6, 1024, %s1155_s8, %s154_s10  }
  0x2d   : > { %p1369_p1 = scmp.lt.s32.totalorder %s1059_s17, 3  ;;  %p1370_p2 = scmp.ge.s32.totalorder %s1059_s17, 1 }
  0x2f   : > { %p173_p5 = pnand %p1370_p2, %p1369_p1 }
  0x30   : > { %s1195_s5 = sand.u32 (!%p173_p5), 1, %s1043_s13  }
  0x31   : > { %176 = sbr.rel (%p173_p5) target bundleno = 325 (0x145), region = 32  ;;  %s849_s7 = sshll.u32 (!%p173_p5), %s1195_s5, 6 }
  0x32   : > { %s179_s11 = scalar_lea.sflag (!%p173_p5), [#allocation3], %s1195_s5  ;;  %s1201_s9 = scalar_lea.vmem (!%p173_p5), [#allocation2], %s849_s7 }
  0x38   : > { %1030 = dma.done.wait (%p1131_p8), %s179_s11, 1024  }
  0x39   : > { %1032 = vsyncadd (%p1131_p8), %s179_s11, 4294966272  ;;  %v1062_v0 = vmov 0   ;;  %v208_v1 = vld [vmem:[%s1201_s9] sm:$0xff]  ;;  %vm262_vm0 = vcmask 1041408   ;;  %v209_v2 = vld [vmem:[%s1201_s9 + $0x8] sm:$0xff]  ;;  %vm258_vm1 = vcmask 31744  }
  0x3a   : > { %343 = vmatprep.mubr.bf16.mxu0 %v1062_v0  ;;  %384 = vmatprep.mubr.bf16.mxu1 %v1062_v0  ;;  %v224_v3 = vcombine.high %v208_v1, %v208_v1  ;;  %v225_v4 = vcombine.high %v209_v2, %v209_v2  ;;  %v240_v5 = vpack.c.bf16 %v208_v1, %v208_v1  ;;  %v210_v7 = vld [vmem:[%s1201_s9 + $0x10] sm:$0xff]  ;;  %v211_v8 = vld [vmem:[%s1201_s9 + $0x18] sm:$0xff]  ;;  %v256_v9 = vld [vmem:[%s1360_s1] sm:$0xf]  ;;  %s1275_s21 = scalar_lea.vmem [#allocation5], %s849_s7  ;;  %s874_s22 = sshll.u32 %s1051_s15, 10 }
  0x3b   : > { %938 = vset.pattern.permute.xlu0 %v1062_v0  ;;  %v242_v6 = vpack.c.bf16 %v209_v2, %v209_v2  ;;  %v226_v10 = vcombine.high %v210_v7, %v210_v7  ;;  %v227_v11 = vcombine.high %v211_v8, %v211_v8  ;;  %v244_v12 = vpack.c.bf16 %v210_v7, %v210_v7  ;;  %v212_v13 = vld [vmem:[%s1201_s9 + $0x20] sm:$0xff]  ;;  %v213_v14 = vld [vmem:[%s1201_s9 + $0x28] sm:$0xff]  ;;  %v214_v31 = vld [vmem:[%s1201_s9 + $0x30] sm:$0xff]  ;;  %s757_s23 = sshll.u32 %s1275_s21, 4  ;;  %s1308_s30 = scalar_lea.hbm %s1362_s3, %s874_s22  ;;  %s1310_s23 = int_to_ptr.vmem [resolvable:$true] %s757_s23 }
  0x3c   : > { %v241_v15 = vpack.c.bf16 %v224_v3, %v224_v3  ;;  %v243_v16 = vpack.c.bf16 %v225_v4, %v225_v4  ;;  %v264_v17 = vsel %vm262_vm0, %v240_v5, 0  ;;  %v639_v19 = vld [vmem:[%s1361_s2] sm:$0xf]  ;;  %v246_v22 = vpack.c.bf16 %v211_v8, %v211_v8  ;;  %v867_v26 = vld [vmem:[%s1361_s2 + $0x4] sm:$0xf]  ;;  %v215_v32 = vld [vmem:[%s1201_s9 + $0x38] sm:$0xff] }
  0x3d   : > { %v270_v18 = vsel %vm262_vm0, %v242_v6, 0  ;;  %v245_v20 = vpack.c.bf16 %v226_v10, %v226_v10  ;;  %v247_v21 = vpack.c.bf16 %v227_v11, %v227_v11  ;;  %642 = vperm.xlu0 %938, %v639_v19   ;;  %v257_v23 = vpack.c.bf16 %v256_v9, %v256_v9  ;;  %s741_s4 = scalar_lea.sflag [#allocation4], %s1195_s5  ;;  %s977_s7 = scalar_lea.vmem %s1310_s23, 1024 }
  0x3e   : > { %851 = vmatprep.subr.msk.bf16.mxu0 %vm262_vm0, %v241_v15  ;;  %853 = vmatprep.subr.msk.bf16.mxu1 %vm262_vm0, %v243_v16  ;;  %v228_v24 = vcombine.high %v212_v13, %v212_v13  ;;  %v229_v25 = vcombine.high %v213_v14, %v213_v14  ;;  %v276_v27 = vsel %vm262_vm0, %v244_v12, 0  ;;  %v282_v28 = vsel %vm262_vm0, %v246_v22, 0  ;;  %p978_p8 = scmp.ne.s32.totalorder %s1310_s23, %s977_s7  ;;  %p1371_p9 = scmp.ne.s32.totalorder %s1366_s25, 0 }
  0x3f   : > { %312 = vmatpush1.bf16.msra.mxu0 %v264_v17  ;;  %353 = vmatpush1.bf16.msra.mxu1 %v270_v18  ;;  %v248_v33 = vpack.c.bf16 %v212_v13, %v212_v13  ;;  %v250_v34 = vpack.c.bf16 %v213_v14, %v213_v14  ;;  %v230_v35 = vcombine.high %v214_v31, %v214_v31  ;;  %s1063_s15 = smov [#allocation5]  }
  0x40   : > { %855 = vmatprep.subr.msk.bf16.mxu0 %vm262_vm0, %v245_v20  ;;  %857 = vmatprep.subr.msk.bf16.mxu1 %vm262_vm0, %v247_v21  ;;  %v249_v29 = vpack.c.bf16 %v228_v24, %v228_v24  ;;  %v251_v30 = vpack.c.bf16 %v229_v25, %v229_v25  ;;  %v231_v36 = vcombine.high %v215_v32, %v215_v32  ;;  %p979_p11 = pnand %p978_p8, %p1371_p9  ;;  %s981_s11 = sshll.u32 %s1063_s15, 4  ;;  %s982_s11 = int_to_ptr.vmem [resolvable:$false] %s981_s11 }
  0x41   : > { %665 = vperm.xlu0 %938, %v867_v26   ;;  %v288_v37 = vsel %vm262_vm0, %v248_v33, 0  ;;  %v294_v38 = vsel %vm262_vm0, %v250_v34, 0  ;;  %v253_v39 = vpack.c.bf16 %v230_v35, %v230_v35  ;;  %v252_v41 = vpack.c.bf16 %v214_v31, %v214_v31  ;;  %s983_s9 = scalar_lea.vmem %s982_s11, 2048  ;;  %p984_p7 = scmp.lt.s32.totalorder %s1310_s23, %s982_s11 }
  0x42   : > { %852 = vmatmul.mubr.msk.bf16.vlgmr.msra.gmra.mrb[0].mxu0 %vm258_vm1, %v257_v23  ;;  %854 = vmatmul.mubr.msk.bf16.vlgmr.msra.gmra.mrb[0].mxu1 %vm258_vm1, %v257_v23  ;;  %v255_v40 = vpack.c.bf16 %v231_v36, %v231_v36  ;;  %v254_v42 = vpack.c.bf16 %v215_v32, %v215_v32  ;;  %p980_p0 = pneg %p979_p11  ;;  %p985_p13 = scmp.lt.s32.totalorder %s983_s9, %s977_s7 }
  0x43   : > { %394 = vmatpush1.bf16.msra.mxu0 %v276_v27  ;;  %435 = vmatpush1.bf16.msra.mxu1 %v282_v28  ;;  %v300_v43 = vsel %vm262_vm0, %v252_v41, 0 }
  0x44   : > { %425 = vmatprep.mubr.bf16.mxu0 %v1062_v0  ;;  %466 = vmatprep.mubr.bf16.mxu1 %v1062_v0  ;;  %v306_v44 = vsel %vm262_vm0, %v254_v42, 0  ;;  %p986_p3 = por %p985_p13, %p984_p7 }
  0x45   : > { %859 = vmatprep.subr.msk.bf16.mxu0 %vm262_vm0, %v249_v29  ;;  %861 = vmatprep.subr.msk.bf16.mxu1 %vm262_vm0, %v251_v30 }
  0x46   : > { %p987_p6 = pnand %p986_p3, %p980_p0 }
  0x4a   : > { %856 = vmatmul.mubr.msk.bf16.vlgmr.msra.gmra.mrb[4].mxu0 %vm258_vm1, %v257_v23  ;;  %858 = vmatmul.mubr.msk.bf16.vlgmr.msra.gmra.mrb[4].mxu1 %vm258_vm1, %v257_v23 }
  0x4b   : > { %476 = vmatpush1.bf16.msra.mxu0 %v288_v37  ;;  %517 = vmatpush1.bf16.msra.mxu1 %v294_v38 }
  0x4c   : > { %507 = vmatprep.mubr.bf16.mxu0 %v1062_v0  ;;  %548 = vmatprep.mubr.bf16.mxu1 %v1062_v0 }
  0x4d   : > { %863 = vmatprep.subr.msk.bf16.mxu0 %vm262_vm0, %v253_v39  ;;  %865 = vmatprep.subr.msk.bf16.mxu1 %vm262_vm0, %v255_v40 }
  0x52   : > { %860 = vmatmul.mubr.msk.bf16.vlgmr.msra.gmra.mrb[8].mxu0 %vm258_vm1, %v257_v23  ;;  %862 = vmatmul.mubr.msk.bf16.vlgmr.msra.gmra.mrb[8].mxu1 %vm258_vm1, %v257_v23 }
  0x53   : > { %558 = vmatpush1.bf16.msra.mxu0 %v300_v43  ;;  %599 = vmatpush1.bf16.msra.mxu1 %v306_v44 }
  0x54   : > { %589 = vmatprep.mubr.bf16.mxu0 %v1062_v0  ;;  %630 = vmatprep.mubr.bf16.mxu1 %v1062_v0 }
  0x5a   : > { %864 = vmatmul.mubr.msk.bf16.vlgmr.msra.gmra.mrb[12].mxu0 %vm258_vm1, %v257_v23  ;;  %866 = vmatmul.mubr.msk.bf16.vlgmr.msra.gmra.mrb[12].mxu1 %vm258_vm1, %v257_v23 }
  0xbc   : > { %v1257_v45 = vpop.permute.xlu0 %642 }
  0xc0   : > { %v1259_v46 = vpop.permute.xlu0 %665 }
 0x115   : > { %v345_v47 = vpop.f32.mrb[0].mxu0  ;;  %v386_v48 = vpop.f32.mrb[0].mxu1 }
 0x116   : > { %v645_v49 = vmul.f32 %v1257_v45, %v345_v47  ;;  %v647_v50 = vmul.f32 %v1257_v45, %v386_v48  ;;  %v347_v51 = vpop.f32.mrb[1].mxu0  ;;  %v388_v52 = vpop.f32.mrb[1].mxu1 }
 0x117   : > { %v646_v53 = vmul.f32 %v1257_v45, %v347_v51  ;;  %v648_v54 = vmul.f32 %v1257_v45, %v388_v52  ;;  %v349_v55 = vpop.f32.mrb[2].mxu0  ;;  %v390_v56 = vpop.f32.mrb[2].mxu1 }
 0x118   : > { %v350_v57 = vpop.f32.mrb[3].mxu0  ;;  %v391_v58 = vpop.f32.mrb[3].mxu1  ;;  %v668_v59 = vadd.f32 %v1259_v46, %v645_v49  ;;  %v670_v60 = vadd.f32 %v1259_v46, %v647_v50 }
 0x119   : > { %v669_v61 = vadd.f32 %v1259_v46, %v646_v53  ;;  %v671_v62 = vadd.f32 %v1259_v46, %v648_v54 }
 0x11a   : > { %v684_v63 = vmax.f32 %v668_v59, 0.0  ;;  %v686_v0 = vmax.f32 %v670_v60, 0.0 }
 0x11b   : > { %v685_v1 = vmax.f32 %v669_v61, 0.0  ;;  %v687_v2 = vmax.f32 %v671_v62, 0.0 }
 0x11d   : > { %v427_v3 = vpop.f32.mrb[4].mxu0  ;;  %v468_v4 = vpop.f32.mrb[4].mxu1  ;;  %v716_v5 = vcombine.low %v684_v63, %v685_v1  ;;  %v717_v6 = vcombine.low %v686_v0, %v687_v2 }
 0x11e   : > { %v649_v7 = vmul.f32 %v1257_v45, %v427_v3  ;;  %v651_v8 = vmul.f32 %v1257_v45, %v468_v4  ;;  %v429_v9 = vpop.f32.mrb[5].mxu0  ;;  %v470_v10 = vpop.f32.mrb[5].mxu1 }
 0x11f   : > { %v650_v11 = vmul.f32 %v1257_v45, %v429_v9  ;;  %v652_v12 = vmul.f32 %v1257_v45, %v470_v10  ;;  %v431_v13 = vpop.f32.mrb[6].mxu0  ;;  %v472_v14 = vpop.f32.mrb[6].mxu1  ;;  %732 = vst [vmem:[%s1275_s21] sm:$0xff] %v716_v5  ;;  %733 = vst [vmem:[%s1275_s21 + $0x8] sm:$0xff] %v717_v6 }
 0x120   : > { %v672_v15 = vadd.f32 %v1259_v46, %v649_v7  ;;  %v674_v16 = vadd.f32 %v1259_v46, %v651_v8  ;;  %v432_v17 = vpop.f32.mrb[7].mxu0  ;;  %v473_v18 = vpop.f32.mrb[7].mxu1 }
 0x121   : > { %v673_v19 = vadd.f32 %v1259_v46, %v650_v11  ;;  %v675_v20 = vadd.f32 %v1259_v46, %v652_v12 }
 0x122   : > { %v688_v21 = vmax.f32 %v672_v15, 0.0  ;;  %v690_v22 = vmax.f32 %v674_v16, 0.0 }
 0x123   : > { %v689_v23 = vmax.f32 %v673_v19, 0.0  ;;  %v691_v24 = vmax.f32 %v675_v20, 0.0 }
 0x125   : > { %v718_v25 = vcombine.low %v688_v21, %v689_v23  ;;  %v719_v26 = vcombine.low %v690_v22, %v691_v24  ;;  %v509_v27 = vpop.f32.mrb[8].mxu0  ;;  %v550_v28 = vpop.f32.mrb[8].mxu1 }
 0x126   : > { %v653_v29 = vmul.f32 %v1257_v45, %v509_v27  ;;  %v655_v30 = vmul.f32 %v1257_v45, %v550_v28  ;;  %v511_v31 = vpop.f32.mrb[9].mxu0  ;;  %v552_v32 = vpop.f32.mrb[9].mxu1 }
 0x127   : > { %734 = vst [vmem:[%s1275_s21 + $0x10] sm:$0xff] %v718_v25  ;;  %735 = vst [vmem:[%s1275_s21 + $0x18] sm:$0xff] %v719_v26  ;;  %v654_v33 = vmul.f32 %v1257_v45, %v511_v31  ;;  %v656_v34 = vmul.f32 %v1257_v45, %v552_v32  ;;  %v513_v35 = vpop.f32.mrb[10].mxu0  ;;  %v554_v36 = vpop.f32.mrb[10].mxu1 }
 0x128   : > { %v676_v37 = vadd.f32 %v1259_v46, %v653_v29  ;;  %v678_v38 = vadd.f32 %v1259_v46, %v655_v30  ;;  %v514_v39 = vpop.f32.mrb[11].mxu0  ;;  %v555_v40 = vpop.f32.mrb[11].mxu1 }
 0x129   : > { %v677_v41 = vadd.f32 %v1259_v46, %v654_v33  ;;  %v679_v42 = vadd.f32 %v1259_v46, %v656_v34 }
 0x12a   : > { %v692_v43 = vmax.f32 %v676_v37, 0.0  ;;  %v694_v44 = vmax.f32 %v678_v38, 0.0 }
 0x12b   : > { %v693_v47 = vmax.f32 %v677_v41, 0.0  ;;  %v695_v48 = vmax.f32 %v679_v42, 0.0 }
 0x12d   : > { %v720_v49 = vcombine.low %v692_v43, %v693_v47  ;;  %v721_v50 = vcombine.low %v694_v44, %v695_v48  ;;  %v591_v51 = vpop.f32.mrb[12].mxu0  ;;  %v632_v52 = vpop.f32.mrb[12].mxu1 }
 0x12e   : > { %v657_v53 = vmul.f32 %v1257_v45, %v591_v51  ;;  %v659_v54 = vmul.f32 %v1257_v45, %v632_v52  ;;  %v593_v55 = vpop.f32.mrb[13].mxu0  ;;  %v634_v56 = vpop.f32.mrb[13].mxu1 }
 0x12f   : > { %736 = vst [vmem:[%s1275_s21 + $0x20] sm:$0xff] %v720_v49  ;;  %737 = vst [vmem:[%s1275_s21 + $0x28] sm:$0xff] %v721_v50  ;;  %v658_v57 = vmul.f32 %v1257_v45, %v593_v55  ;;  %v660_v58 = vmul.f32 %v1257_v45, %v634_v56  ;;  %v595_v59 = vpop.f32.mrb[14].mxu0  ;;  %v636_v60 = vpop.f32.mrb[14].mxu1 }
 0x130   : > { %v680_v61 = vadd.f32 %v1259_v46, %v657_v53  ;;  %v682_v62 = vadd.f32 %v1259_v46, %v659_v54  ;;  %v596_v63 = vpop.f32.mrb[15].mxu0  ;;  %v637_v0 = vpop.f32.mrb[15].mxu1 }
 0x131   : > { %v681_v1 = vadd.f32 %v1259_v46, %v658_v57  ;;  %v683_v2 = vadd.f32 %v1259_v46, %v660_v58 }
 0x132   : > { %v696_v3 = vmax.f32 %v680_v61, 0.0  ;;  %v698_v4 = vmax.f32 %v682_v62, 0.0 }
 0x133   : > { %v697_v45 = vmax.f32 %v681_v1, 0.0  ;;  %v699_v5 = vmax.f32 %v683_v2, 0.0 }
 0x135   : > { %v722_v6 = vcombine.low %v696_v3, %v697_v45  ;;  %v723_v7 = vcombine.low %v698_v4, %v699_v5 }
 0x137   : > { %738 = vst [vmem:[%s1275_s21 + $0x30] sm:$0xff] %v722_v6  ;;  %739 = vst [vmem:[%s1275_s21 + $0x38] sm:$0xff] %v723_v7 }
 0x138   : > { %990 = shalt.err (!%p987_p6)
}
 0x139   : > { %s991_s5 = scalar_lea.hbm %s1308_s30, 1024  ;;  %s995_s8 = scalar_lea.hbm %s1362_s3, 2048 }
 0x13a   : > { %p992_p4 = scmp.ne.s32.totalorder %s1308_s30, %s991_s5  ;;  %p996_p1 = scmp.lt.u32.totalorder %s1308_s30, %s1362_s3 }
 0x13b   : > { %p997_p2 = scmp.lt.u32.totalorder %s995_s8, %s991_s5  ;;  %p999_p8 = scmp.lt.u32.totalorder %s991_s5, %s1308_s30 }
 0x13c   : > { %p993_p10 = pnand %p992_p4, %p1371_p9 }
 0x13d   : > { %p998_p5 = por %p997_p2, %p996_p1 }
 0x13e   : > { %p994_p12 = pneg %p993_p10 }
 0x13f   : > { %p1000_p11 = por %p999_p8, %p998_p5 }
 0x141   : > { %p1001_p0 = pnand %p1000_p11, %p994_p12 }
 0x143   : > { %1004 = shalt.err (!%p1001_p0)
}
 0x144   : > { %877 = dma.vmem_to_hbm [thread:$0]  (%p1371_p9), %s1310_s23, 1024, %s1308_s30, %s741_s4  }
 0x145 PF: > { %s769_s19 = sand.u32 1, %s1039_s12   ;;  %p1372_p7 = scmp.ne.s32.totalorder %s1367_s27, 0 }
 0x146   : > { %p1373_p13 = scmp.ge.s32.totalorder %s1059_s17, 2  ;;  %s770_s21 = scalar_lea.sflag [#allocation4], %s769_s19 }
 0x148   : > { %p884_p3 = pnand %p1373_p13, %p1372_p7 }
 0x14a   : > { %1034 = dma.done.wait (!%p884_p3), %s770_s21, 1024  }
 0x14b   : > { %1036 = vsyncadd (!%p884_p3), %s770_s21, 4294966272  ;;  %s19_s17 = sadd.s32 1, %s1059_s17   ;;  %s1374_s12 = smov %s1043_s13 }
 0x14c   : > { %p16_p6 = scmp.ge.s32.totalorder %s19_s17, 4   ;;  %s1375_s13 = smov %s1047_s14 }
 0x14d   : > { %s1376_s14 = smov %s1140_s26  ;;  %s1377_s15 = smov %s1055_s16 }
 0x14e   : > { %s1378_s16 = smov %s1380_s20  ;;  %18 = sbr.rel (!%p16_p6) target bundleno = 6 (0x6), region = 78 }
 0x155   :  { %775 = vsyncpa [#allocation3], 1 }
 0x156   :  { %777 = vsyncpa [#allocation3 + $0x1], 1 }
 0x157   :  { %778 = vsyncpa [#allocation4], 1 }
 0x158   :  { %780 = vsyncpa [#allocation4 + $0x1], 1 }

</bundles_post_ra>
